<compile_context>
chip_gen: v7x
topology: tpu7x:2x2x1
jax: 0.10.0
libtpu: 0.0.40
codegen_flags: <defaults>
</compile_context>

<pallas_src>
import functools
import math

import jax
import jax.numpy as jnp
from jax.experimental import pallas as pl
from jax.experimental.pallas import tpu as pltpu

_BLOCK_BYTES = 4 << 20   # target bytes per operand block (2-4 MiB sweet spot)
_VMEM_LIMIT = 48 << 20   # 6 double-buffered blocks + f32 temps; fits v7x's 64 MiB


def _gate_kernel(x1_ref, x2_ref, o_ref, *, eps, n_red):
    """x1_ref / x2_ref / o_ref: (TP, R); each row is normalized independently over R."""
    x1 = x1_ref[...].astype(jnp.float32)
    x2 = x2_ref[...].astype(jnp.float32)

    t = jnp.tanh(x1)                        # EUP
    s = 0.5 * jnp.tanh(0.5 * x2) + 0.5      # sigmoid via tanh: 1 EUP op, no divide

    inv_n = 1.0 / n_red
    inv_nm1 = 1.0 / max(n_red - 1, 1)       # torch.std default: unbiased (ddof=1)
    # TODO(synk): n_red == 1 -> torch.std returns NaN; this kernel returns 0 instead.

    def _stats(v):
        # One traversal: sum and sum-of-squares (v is bounded in [-1,1]/[0,1]).
        sv = jnp.sum(v, axis=-1, keepdims=True)
        sq = jnp.sum(v * v, axis=-1, keepdims=True)
        mean = sv * inv_n
        var = jnp.maximum(sq - sv * mean, 0.0) * inv_nm1
        return mean, 1.0 / (jnp.sqrt(var) + eps)   # per-row (TP,1), exact, negligible

    m1, i1 = _stats(t)
    m2, i2 = _stats(s)
    # Fold both per-row scales into one block multiply: ((t-m1)*(s-m2)) * (i1*i2).
    o_ref[...] = (((t - m1) * (s - m2)) * (i1 * i2)).astype(o_ref.dtype)


def _row_tile(p, row_bytes, itemsize):
    """Rows per block: full extent when tiny, else a sublane-aligned multiple sized
    to ~_BLOCK_BYTES, keeping >= ~8 grid steps when `p` allows (megacore)."""
    # TODO(synk): very large reduce sizes (sub * row_bytes >> _BLOCK_BYTES) would need
    # an R-chunked sum/sumsq two-pass kernel to stay inside v7x's 64 MiB VMEM.
    sub = {4: 8, 2: 16, 1: 32}.get(itemsize, 8)
    if p <= sub:
        return p                                   # full dim (allowed unaligned)
    cap = max(sub, (_BLOCK_BYTES // max(row_bytes, 1)) // sub * sub)
    want = (p // 8) // sub * sub if p >= 8 * sub else sub
    tp = min(cap, max(want, sub))
    return max(sub, min(tp, (p // sub) * sub))


def _gate_all_nonbatch(x, r, eps):
    """dims == all non-batch dims: each half's reduce block is contiguous per batch
    row, so a free reshape to (N, 2R) plus two column-offset BlockSpecs on the SAME
    array replace the channel slice / transpose / pad (no extra HBM passes)."""
    n = x.shape[0]
    x2d = x.reshape(n, 2 * r)
    tn = _row_tile(n, r * x.dtype.itemsize, x.dtype.itemsize)
    kernel = functools.partial(_gate_kernel, eps=float(eps), n_red=r)
    out = pl.pallas_call(
        kernel,
        out_shape=jax.ShapeDtypeStruct((n, r), x.dtype),
        grid=(pl.cdiv(n, tn),),
        in_specs=[
            pl.BlockSpec((tn, r), lambda i: (i, 0)),   # x1 half: columns [0, R)
            pl.BlockSpec((tn, r), lambda i: (i, 1)),   # x2 half: columns [R, 2R)
        ],
        out_specs=pl.BlockSpec((tn, r), lambda i: (i, 0)),
        compiler_params=pltpu.CompilerParams(
            dimension_semantics=("parallel",), vmem_limit_bytes=_VMEM_LIMIT),
    )(x2d, x2d)
    return out.reshape((n, x.shape[1] // 2) + x.shape[2:])


def _gate_trailing_keepc(x, dims, eps):
    """Trailing reduce dims that keep the channel axis (e.g. dim=-1 or [2,3]):
    free reshape to (N, 2, rows, R); the half split becomes an index into the
    size-2 axis, so again no copies and no padding."""
    n, c = x.shape[0], x.shape[1]
    keep_mid = x.shape[2:dims[0]]
    red = x.shape[dims[0]:]
    rows = (c // 2) * math.prod(keep_mid)
    r = math.prod(red)
    x4 = x.reshape(n, 2, rows, r)
    tp = _row_tile(rows, r * x.dtype.itemsize, x.dtype.itemsize)
    kernel = functools.partial(_gate_kernel, eps=float(eps), n_red=r)
    # TODO(synk): when R < 128 a sublane-axis reduction layout would keep stores
    # lane-dense; correctness is unaffected here.
    out = pl.pallas_call(
        kernel,
        out_shape=jax.ShapeDtypeStruct((n, rows, r), x.dtype),
        grid=(n, pl.cdiv(rows, tp)),
        in_specs=[
            pl.BlockSpec((None, None, tp, r), lambda b, i: (b, 0, i, 0)),  # x1 half
            pl.BlockSpec((None, None, tp, r), lambda b, i: (b, 1, i, 0)),  # x2 half
        ],
        out_specs=pl.BlockSpec((None, tp, r), lambda b, i: (b, i, 0)),
        compiler_params=pltpu.CompilerParams(
            dimension_semantics=("parallel", "parallel"),
            vmem_limit_bytes=_VMEM_LIMIT),
    )(x4, x4)
    return out.reshape((n, c // 2) + keep_mid + red)


def _gate_general(x, dims, eps):
    """Fallback for non-trailing / non-contiguous reduce dims: slice the halves,
    move the reduce dims to the lane axis and flatten. Correct for any `dims` but
    pays extra HBM passes for the slice/transpose."""
    # TODO(synk): for non-trailing dims (e.g. dim=1) a sublane-axis reduction with
    # the kept spatial dims on lanes would avoid these wrapper copies entirely.
    c = x.shape[1]
    half = c // 2
    x1, x2 = x[:, :half], x[:, half:]
    shape = x1.shape
    nd = len(shape)
    keep = tuple(d for d in range(nd) if d not in dims)
    perm = keep + dims
    keep_shape = tuple(shape[d] for d in keep)
    red_shape = tuple(shape[d] for d in dims)
    p = math.prod(keep_shape)
    r = math.prod(red_shape)
    x1p = jnp.transpose(x1, perm).reshape(p, r)
    x2p = jnp.transpose(x2, perm).reshape(p, r)
    tp = _row_tile(p, r * x.dtype.itemsize, x.dtype.itemsize)
    kernel = functools.partial(_gate_kernel, eps=float(eps), n_red=r)
    out = pl.pallas_call(
        kernel,
        out_shape=jax.ShapeDtypeStruct((p, r), x.dtype),
        grid=(pl.cdiv(p, tp),),
        in_specs=[
            pl.BlockSpec((tp, r), lambda i: (i, 0)),
            pl.BlockSpec((tp, r), lambda i: (i, 0)),
        ],
        out_specs=pl.BlockSpec((tp, r), lambda i: (i, 0)),
        compiler_params=pltpu.CompilerParams(
            dimension_semantics=("parallel",), vmem_limit_bytes=_VMEM_LIMIT),
    )(x1p, x2p)
    out = out.reshape(keep_shape + red_shape)
    inv_perm = [0] * nd
    for i, d in enumerate(perm):
        inv_perm[d] = i
    return jnp.transpose(out, inv_perm)


def gate(x, dim, eps=1e-5):
    """Matches Gate.forward: split channels (axis 1) in half, x1 <- norm(tanh(x1)),
    x2 <- norm(sigmoid(x2)), return x1 * x2.  `dim` are the FlexibleLayerNorm
    reduce dims (int or list), interpreted w.r.t. each half's shape."""
    c = x.shape[1]
    assert c % 2 == 0, "channels number must be even"
    nd = x.ndim
    dims = (dim,) if isinstance(dim, int) else tuple(dim)
    dims = tuple(sorted({d % nd for d in dims}))
    trailing = dims == tuple(range(nd - len(dims), nd))

    if trailing and dims[0] == 1:              # normalize over all non-batch dims
        r = (c // 2) * math.prod(x.shape[2:])
        if r % 128 == 0:
            return _gate_all_nonbatch(x, r, eps)
        # TODO(synk): r % 128 != 0 could still avoid copies by loading one
        # double-width block and splitting in-kernel; using the fallback for now.
    elif trailing and dims[0] >= 2:            # trailing dims, channel kept
        return _gate_trailing_keepc(x, dims, eps)
    return _gate_general(x, dims, eps)


def _reference(x, dim, eps=1e-5):
    """Pure-JAX replica of the PyTorch Gate (torch.std default is unbiased)."""
    c = x.shape[1]
    x1, x2 = x[:, :c // 2], x[:, c // 2:]
    dims = (dim,) if isinstance(dim, int) else tuple(dim)

    def norm(v):
        mean = jnp.mean(v, axis=dims, keepdims=True)
        std = jnp.std(v, axis=dims, keepdims=True, ddof=1)
        return (v - mean) / (std + eps)

    return norm(jnp.tanh(x1)) * norm(jax.nn.sigmoid(x2))


if __name__ == "__main__":
    key = jax.random.PRNGKey(0)
    x = jax.random.normal(key, (2, 4, 16, 16), dtype=jnp.float32)  # N, C, H, W

    # Exercises every path: all-non-batch fast path ([1,2,3]), trailing-dims
    # channel-kept path ([2,3], -1) and the general transpose fallback (2, [1,3]).
    # Tolerance 2e-4: the in-kernel one-pass sum/sumsq variance differs slightly
    # from the reference's two-pass std.
    for dim in ([1, 2, 3], [2, 3], -1, 2, [1, 3]):
        out = jax.block_until_ready(gate(x, dim, eps=1e-5))
        ref = jax.block_until_ready(_reference(x, dim, eps=1e-5))
        assert out.shape == ref.shape, (dim, out.shape, ref.shape)
        err = float(jnp.max(jnp.abs(out - ref)))
        assert jnp.allclose(out, ref, atol=2e-4, rtol=2e-4), (dim, err)

    print("KERNEL_OK")
</pallas_src>

<mosaic_0001>
module attributes {stable_mosaic.version = 11 : i64} {
  func.func @_gate_kernel(%arg0: i32, %arg1: memref<2x512xf32, #tpu.memory_space<vmem>>, %arg2: memref<2x512xf32, #tpu.memory_space<vmem>>, %arg3: memref<2x512xf32, #tpu.memory_space<vmem>>) attributes {dimension_semantics = [#tpu.dimension_semantics<parallel>], iteration_bounds = array<i64: 1>, scalar_prefetch = 0 : i64, scratch_operands = 0 : i64, tpu.core_type = #tpu.core_type<tc>, window_params = [{transform_indices = @transform_0, window_bounds = array<i64: 2, 512>}, {transform_indices = @transform_1, window_bounds = array<i64: 2, 512>}, {transform_indices = @transform_2, window_bounds = array<i64: 2, 512>}]} {
    %c0 = arith.constant 0 : index
    %c0_0 = arith.constant 0 : index
    %0 = vector.load %arg1[%c0, %c0_0] : memref<2x512xf32, #tpu.memory_space<vmem>>, vector<2x512xf32>
    %c0_1 = arith.constant 0 : index
    %c0_2 = arith.constant 0 : index
    %1 = vector.load %arg2[%c0_1, %c0_2] : memref<2x512xf32, #tpu.memory_space<vmem>>, vector<2x512xf32>
    %2 = math.tanh %0 : vector<2x512xf32>
    %cst = arith.constant 5.000000e-01 : f32
    %3 = vector.broadcast %cst : f32 to vector<2x512xf32>
    %4 = arith.mulf %3, %1 : vector<2x512xf32>
    %5 = math.tanh %4 : vector<2x512xf32>
    %cst_3 = arith.constant 5.000000e-01 : f32
    %6 = vector.broadcast %cst_3 : f32 to vector<2x512xf32>
    %7 = arith.mulf %6, %5 : vector<2x512xf32>
    %cst_4 = arith.constant 5.000000e-01 : f32
    %8 = vector.broadcast %cst_4 : f32 to vector<2x512xf32>
    %9 = arith.addf %7, %8 : vector<2x512xf32>
    %cst_5 = arith.constant dense<0.000000e+00> : vector<2xf32>
    %10 = vector.multi_reduction <add>, %2, %cst_5 [1] : vector<2x512xf32> to vector<2xf32>
    %11 = vector.shape_cast %10 : vector<2xf32> to vector<2x1xf32>
    %12 = arith.mulf %2, %2 : vector<2x512xf32>
    %cst_6 = arith.constant dense<0.000000e+00> : vector<2xf32>
    %13 = vector.multi_reduction <add>, %12, %cst_6 [1] : vector<2x512xf32> to vector<2xf32>
    %14 = vector.shape_cast %13 : vector<2xf32> to vector<2x1xf32>
    %cst_7 = arith.constant 0.001953125 : f32
    %15 = vector.broadcast %cst_7 : f32 to vector<2x1xf32>
    %16 = arith.mulf %11, %15 : vector<2x1xf32>
    %17 = arith.mulf %11, %16 : vector<2x1xf32>
    %18 = arith.subf %14, %17 : vector<2x1xf32>
    %cst_8 = arith.constant 0.000000e+00 : f32
    %19 = vector.broadcast %cst_8 : f32 to vector<2x1xf32>
    %20 = arith.maximumf %18, %19 : vector<2x1xf32>
    %cst_9 = arith.constant 0.00195694715 : f32
    %21 = vector.broadcast %cst_9 : f32 to vector<2x1xf32>
    %22 = arith.mulf %20, %21 : vector<2x1xf32>
    %23 = math.sqrt %22 : vector<2x1xf32>
    %cst_10 = arith.constant 9.99999974E-6 : f32
    %24 = vector.broadcast %cst_10 : f32 to vector<2x1xf32>
    %25 = arith.addf %23, %24 : vector<2x1xf32>
    %cst_11 = arith.constant 1.000000e+00 : f32
    %26 = vector.broadcast %cst_11 : f32 to vector<2x1xf32>
    %27 = arith.divf %26, %25 : vector<2x1xf32>
    %cst_12 = arith.constant dense<0.000000e+00> : vector<2xf32>
    %28 = vector.multi_reduction <add>, %9, %cst_12 [1] : vector<2x512xf32> to vector<2xf32>
    %29 = vector.shape_cast %28 : vector<2xf32> to vector<2x1xf32>
    %30 = arith.mulf %9, %9 : vector<2x512xf32>
    %cst_13 = arith.constant dense<0.000000e+00> : vector<2xf32>
    %31 = vector.multi_reduction <add>, %30, %cst_13 [1] : vector<2x512xf32> to vector<2xf32>
    %32 = vector.shape_cast %31 : vector<2xf32> to vector<2x1xf32>
    %cst_14 = arith.constant 0.001953125 : f32
    %33 = vector.broadcast %cst_14 : f32 to vector<2x1xf32>
    %34 = arith.mulf %29, %33 : vector<2x1xf32>
    %35 = arith.mulf %29, %34 : vector<2x1xf32>
    %36 = arith.subf %32, %35 : vector<2x1xf32>
    %cst_15 = arith.constant 0.000000e+00 : f32
    %37 = vector.broadcast %cst_15 : f32 to vector<2x1xf32>
    %38 = arith.maximumf %36, %37 : vector<2x1xf32>
    %cst_16 = arith.constant 0.00195694715 : f32
    %39 = vector.broadcast %cst_16 : f32 to vector<2x1xf32>
    %40 = arith.mulf %38, %39 : vector<2x1xf32>
    %41 = math.sqrt %40 : vector<2x1xf32>
    %cst_17 = arith.constant 9.99999974E-6 : f32
    %42 = vector.broadcast %cst_17 : f32 to vector<2x1xf32>
    %43 = arith.addf %41, %42 : vector<2x1xf32>
    %cst_18 = arith.constant 1.000000e+00 : f32
    %44 = vector.broadcast %cst_18 : f32 to vector<2x1xf32>
    %45 = arith.divf %44, %43 : vector<2x1xf32>
    %46 = vector.broadcast %16 : vector<2x1xf32> to vector<2x512xf32>
    %47 = arith.subf %2, %46 : vector<2x512xf32>
    %48 = vector.broadcast %34 : vector<2x1xf32> to vector<2x512xf32>
    %49 = arith.subf %9, %48 : vector<2x512xf32>
    %50 = arith.mulf %47, %49 : vector<2x512xf32>
    %51 = arith.mulf %27, %45 : vector<2x1xf32>
    %52 = vector.broadcast %51 : vector<2x1xf32> to vector<2x512xf32>
    %53 = arith.mulf %50, %52 : vector<2x512xf32>
    %c0_19 = arith.constant 0 : index
    %c0_20 = arith.constant 0 : index
    %54 = vector.load %arg3[%c0_19, %c0_20] : memref<2x512xf32, #tpu.memory_space<vmem>>, vector<2x512xf32>
    tpu.vector_store %arg3[%c0_19, %c0_20], %53 {strides = array<i32>} : memref<2x512xf32, #tpu.memory_space<vmem>>, vector<2x512xf32>,
    return
  }
  func.func @transform_0(%arg0: i32) -> (i32, i32) {
    %c0_i32 = arith.constant 0 : i32
    %c0_i32_0 = arith.constant 0 : i32
    return %arg0, %c0_i32 : i32, i32
  }
  func.func @transform_1(%arg0: i32) -> (i32, i32) {
    %c1_i32 = arith.constant 1 : i32
    %c0_i32 = arith.constant 0 : i32
    return %arg0, %c1_i32 : i32, i32
  }
  func.func @transform_2(%arg0: i32) -> (i32, i32) {
    %c0_i32 = arith.constant 0 : i32
    %c0_i32_0 = arith.constant 0 : i32
    return %arg0, %c0_i32 : i32, i32
  }
}

</mosaic_0001>

<bundles_post_ra>
// kernel: tpu_custom_call.1
= control target key start
LH: loop header
LB: loop body
LE: loop exit
PB: predicated region body
PF: predicated region fallthrough
CT: control target
= control target key end

     0   :  { %7 = vsyncpa [#allocation3], 0  ;;  %s440_s0 = inlined_call_operand.hbm [shape: f32[2,1024], index: 0, kind: input, shape index: {}]   ;;  %s441_s1 = inlined_call_operand.hbm [shape: f32[2,1024], index: 1, kind: input, shape index: {}]   ;;  %s442_s2 = inlined_call_operand.hbm [shape: f32[2,512], index: 2, kind: output, shape index: {}]  }
   0x1   :  { %8 = vsyncpa [#allocation6], 0 }
   0x2   :  { %9 = vsyncpa [#allocation4], 0  ;;  %s365_s11 = scalar_lea.hbm %s441_s1, 128  ;;  %s342_s12 = smov [#allocation2]  }
   0x3   :  { %s16_s13 = sshll.u32 %s342_s12, 4  ;;  %s343_s14 = smov [#allocation5]   ;;  %s17_s13 = int_to_ptr.vmem [resolvable:$true] %s16_s13 }
   0x4   :  { %s27_s15 = sshll.u32 %s343_s14, 4  ;;  %s267_s18 = scalar_lea.hbm %s440_s0, 128  ;;  %s28_s15 = int_to_ptr.vmem [resolvable:$true] %s27_s15 }
   0x5   :  { %p268_p0 = scmp.ne.s32.totalorder %s440_s0, %s267_s18  ;;  %s269_s23 = scalar_lea.hbm %s440_s0, 256 }
   0x6   :  { %p270_p1 = scmp.lt.u32.totalorder %s269_s23, %s267_s18  ;;  %p271_p2 = scmp.lt.u32.totalorder %s267_s18, %s440_s0 }
   0x8   :  { %p272_p3 = por %p271_p2, %p270_p1 }
   0xa   :  { %p273_p4 = pnand %p272_p3, %p268_p0 }
   0xc   :  { %276 = shalt.err (!%p273_p4)
}
   0xd   :  { %s277_s26 = scalar_lea.vmem %s17_s13, 128  ;;  %p282_p6 = scmp.lt.s32.totalorder %s17_s13, %s17_s13 }
   0xe   :  { %p278_p5 = scmp.ne.s32.totalorder %s17_s13, %s277_s26  ;;  %p283_p7 = scmp.lt.s32.totalorder %s277_s26, %s277_s26 }
  0x10   :  { %p284_p8 = por %p283_p7, %p282_p6 }
  0x12   :  { %p285_p9 = pnand %p284_p8, %p278_p5 }
  0x14   :  { %288 = shalt.err (!%p285_p9)
}
  0x15   :  { %19 = dma.hbm_to_vmem [thread:$0]  %s440_s0, 128, %s17_s13, [#allocation3]  }
  0x16   :  { %s313_s3 = scalar_lea.hbm %s441_s1, 256  ;;  %p292_p11 = scmp.lt.u32.totalorder %s365_s11, %s441_s1 }
  0x17   :  { %p290_p10 = scmp.ne.s32.totalorder %s365_s11, %s313_s3  ;;  %p293_p12 = scmp.lt.u32.totalorder %s313_s3, %s313_s3 }
  0x18   :  { %p295_p0 = scmp.lt.u32.totalorder %s313_s3, %s365_s11 }
  0x19   :  { %p294_p13 = por %p293_p12, %p292_p11 }
  0x1b   :  { %p296_p1 = por %p295_p0, %p294_p13 }
  0x1d   :  { %p297_p2 = pnand %p296_p1, %p290_p10 }
  0x1f   :  { %300 = shalt.err (!%p297_p2)
}
  0x20   :  { %s301_s6 = scalar_lea.vmem %s28_s15, 128  ;;  %p306_p4 = scmp.lt.s32.totalorder %s28_s15, %s28_s15 }
  0x21   :  { %p302_p3 = scmp.ne.s32.totalorder %s28_s15, %s301_s6  ;;  %p307_p5 = scmp.lt.s32.totalorder %s301_s6, %s301_s6 }
  0x23   :  { %p308_p6 = por %p307_p5, %p306_p4 }
  0x25   :  { %p309_p7 = pnand %p308_p6, %p302_p3 }
  0x27   :  { %312 = shalt.err (!%p309_p7)
}
  0x28   :  { %30 = dma.hbm_to_vmem [thread:$0]  %s365_s11, 128, %s28_s15, [#allocation6]  }
  0x29   :  { %336 = dma.done.wait [#allocation3], 128  }
  0x2a   :  { %337 = vsyncadd [#allocation3], 4294967168 }
  0x2b   :  { %338 = dma.done.wait [#allocation6], 128  }
  0x2c   :  { %339 = vsyncadd [#allocation6], 4294967168  ;;  %v37_v0 = vld [vmem:[#allocation2] sm:$0xff]  ;;  %v344_v1 = vmov 1983009808   ;;  %v49_v3 = vlaneseq  ;;  %v38_v4 = vld [vmem:[#allocation5] sm:$0xff] }
  0x2d   :  { %v47_v2 = vunpack.c.l.s4 %v344_v1  ;;  %255 = vtanh.f32 %v37_v0  ;;  %v40_v5 = vmul.f32 0.5, %v38_v4  ;;  %vm66_vm0 = vcmask 1041408   ;;  %s346_s0 = smov [#allocation7]  }
  0x2e   :  { %v392_v7 = vshrl.u32 %v49_v3, 7  ;;  %s240_s1 = sshll.u32 %s346_s0, 4  ;;  %s241_s1 = int_to_ptr.vmem [resolvable:$true] %s240_s1 }
  0x2f   :  { %257 = vtanh.f32 %v40_v5  ;;  %v48_v6 = vunpack.c.0.s8 %v47_v2  ;;  %s314_s7 = scalar_lea.vmem %s241_s1, 128  ;;  %p319_p9 = scmp.lt.s32.totalorder %s241_s1, %s241_s1 }
  0x30   :  { %p315_p8 = scmp.ne.s32.totalorder %s241_s1, %s314_s7  ;;  %p320_p10 = scmp.lt.s32.totalorder %s314_s7, %s314_s7 }
  0x31   :  { %v51_v8 = vsub.s32 %v48_v6, %v392_v7 }
  0x32   :  { %p321_p11 = por %p320_p10, %p319_p9 }
  0x34   :  { %p322_p12 = pnand %p321_p11, %p315_p8 }
  0x37   :  { %v395_v9 = vpop.eup %255 }
  0x38   :  { %v45_v10 = vcombine.high %v395_v9, %v395_v9  ;;  %v52_v11 = vrot.slane %v395_v9, %v51_v8  ;;  %v76_v12 = vmul.f32 %v395_v9, %v395_v9 }
  0x39   :  { %v258_v13 = vpop.eup %257 }
  0x3a   :  { %v59_v14 = vrot.slane %v45_v10, %v51_v8  ;;  %v60_v15 = vcombine.high %v52_v11, %v52_v11  ;;  %v67_v16 = vsel %vm66_vm0, %v52_v11, 0.0  ;;  %v78_v17 = vcombine.high %v76_v12, %v76_v12 }
  0x3b   :  { %v85_v18 = vrot.slane %v76_v12, %v51_v8  ;;  %v42_v19 = vmul.f32 0.5, %v258_v13 }
  0x3c   :  { %v61_v20 = vcombine.high %v59_v14, %v59_v14  ;;  %v68_v21 = vsel %vm66_vm0, %v60_v15, 0.0  ;;  %v70_v22 = vsel %vm66_vm0, %v59_v14, 0.0  ;;  %v92_v23 = vrot.slane %v78_v17, %v51_v8 }
  0x3d   :  { %v69_v24 = vadd.f32 %v68_v21, %v67_v16  ;;  %v93_v25 = vcombine.high %v85_v18, %v85_v18  ;;  %v99_v26 = vsel %vm66_vm0, %v85_v18, 0.0  ;;  %v406_v27 = vadd.f32 0.5, %v42_v19 }
  0x3e   :  { %v72_v28 = vsel %vm66_vm0, %v61_v20, 0.0  ;;  %v94_v29 = vcombine.high %v92_v23, %v92_v23  ;;  %v102_v30 = vsel %vm66_vm0, %v92_v23, 0.0 }
  0x3f   :  { %v71_v31 = vadd.f32 %v70_v22, %v69_v24  ;;  %v100_v32 = vsel %vm66_vm0, %v93_v25, 0.0  ;;  %v124_v33 = vcombine.high %v406_v27, %v406_v27  ;;  %v131_v34 = vrot.slane %v406_v27, %v51_v8 }
  0x40   :  { %v101_v35 = vadd.f32 %v100_v32, %v99_v26  ;;  %v104_v36 = vsel %vm66_vm0, %v94_v29, 0.0  ;;  %v154_v37 = vmul.f32 %v406_v27, %v406_v27  ;;  %v345_v22 = vmov 269488144  }
  0x41   :  { %v73_v38 = vadd.f32 %v72_v28, %v71_v31  ;;  %v138_v39 = vrot.slane %v124_v33, %v51_v8  ;;  %v139_v40 = vcombine.high %v131_v34, %v131_v34  ;;  %v145_v41 = vsel %vm66_vm0, %v131_v34, 0.0 }
  0x42   :  { %v103_v42 = vadd.f32 %v102_v30, %v101_v35  ;;  %v156_v43 = vcombine.high %v154_v37, %v154_v37  ;;  %v163_v44 = vrot.slane %v154_v37, %v51_v8  ;;  %v203_v23 = vunpack.c.l.s4 %v345_v22 }
  0x43   :  { %74 = vadd.xlane.f32.xlu0 %v73_v38  ;;  %v140_v45 = vcombine.high %v138_v39, %v138_v39  ;;  %v146_v46 = vsel %vm66_vm0, %v139_v40, 0.0  ;;  %v148_v47 = vsel %vm66_vm0, %v138_v39, 0.0 }
  0x44   :  { %v105_v48 = vadd.f32 %v104_v36, %v103_v42  ;;  %v147_v49 = vadd.f32 %v146_v46, %v145_v41  ;;  %v170_v50 = vrot.slane %v156_v43, %v51_v8  ;;  %v171_v51 = vcombine.high %v163_v44, %v163_v44 }
  0x45   :  { %v150_v52 = vsel %vm66_vm0, %v140_v45, 0.0  ;;  %v177_v53 = vsel %vm66_vm0, %v163_v44, 0.0  ;;  %v204_v30 = vunpack.c.0.s8 %v203_v23 }
  0x46   :  { %106 = vadd.xlane.f32.xlu1 %v105_v48  ;;  %v149_v54 = vadd.f32 %v148_v47, %v147_v49  ;;  %v172_v55 = vcombine.high %v170_v50, %v170_v50  ;;  %v178_v56 = vsel %vm66_vm0, %v171_v51, 0.0  ;;  %v180_v57 = vsel %vm66_vm0, %v170_v50, 0.0 }
  0x47   :  { %v179_v58 = vadd.f32 %v178_v56, %v177_v53  ;;  %v207_v31 = vsub.s32 %v204_v30, %v392_v7 }
  0x48   :  { %v151_v59 = vadd.f32 %v150_v52, %v149_v54  ;;  %v182_v60 = vsel %vm66_vm0, %v172_v55, 0.0 }
  0x49   :  { %v181_v61 = vadd.f32 %v180_v57, %v179_v58 }
  0x4a   :  { %152 = vadd.xlane.f32.xlu0 %v151_v59 }
  0x4b   :  { %v183_v62 = vadd.f32 %v182_v60, %v181_v61 }
  0x4d   :  { %184 = vadd.xlane.f32.xlu1 %v183_v62 }
  0xd0   :  { %v75_v63 = vpop.xlane.xlu0 %74 }
  0xd1   :  { %v108_v0 = vmul.f32 0.001953125, %v75_v63 }
  0xd3   :  { %v109_v1 = vmul.f32 %v108_v0, %v75_v63  ;;  %v107_v2 = vpop.xlane.xlu1 %106  ;;  %v208_v33 = vrot.slane %v108_v0, %v207_v31 }
  0xd5   :  { %v110_v3 = vsub.f32 %v107_v2, %v109_v1  ;;  %v210_v37 = vsub.f32 %v395_v9, %v208_v33 }
  0xd7   :  { %v111_v4 = vmax.f32 %v110_v3, 0.0  ;;  %v153_v5 = vpop.xlane.xlu0 %152 }
  0xd8   :  { %v186_v6 = vmul.f32 0.001953125, %v153_v5 }
  0xd9   :  { %v112_v8 = vmul.f32 0.0019569471, %v111_v4 }
  0xda   :  { %v187_v10 = vmul.f32 %v186_v6, %v153_v5  ;;  %v185_v11 = vpop.xlane.xlu1 %184  ;;  %v218_v32 = vrot.slane %v186_v6, %v207_v31 }
  0xdb   :  { %259 = vrsqrt.f32 %v112_v8  ;;  %vm115_vm1 = vcmp.eq.f32.partialorder %v112_v8, inf  ;;  %v118_v18 = vand.u32 2147483648, %v112_v8  ;;  %vm117_vm2 = vcmp.eq.f32.partialorder %v112_v8, 0.0 }
  0xdc   :  { %v188_v12 = vsub.f32 %v185_v11, %v187_v10  ;;  %v220_v35 = vsub.f32 %v406_v27, %v218_v32 }
  0xde   :  { %v189_v13 = vmax.f32 %v188_v12, 0.0  ;;  %v221_v39 = vmul.f32 %v220_v35, %v210_v37 }
  0xe0   :  { %v190_v14 = vmul.f32 0.0019569471, %v189_v13 }
  0xe2   :  { %261 = vrsqrt.f32 %v190_v14  ;;  %vm193_vm3 = vcmp.eq.f32.partialorder %v190_v14, inf  ;;  %v196_v24 = vand.u32 2147483648, %v190_v14  ;;  %vm195_vm4 = vcmp.eq.f32.partialorder %v190_v14, 0.0 }
  0xe5   :  { %v260_v15 = vpop.eup %259 }
  0xe6   :  { %v114_v16 = vmul.f32 %v260_v15, %v112_v8 }
  0xe8   :  { %v116_v17 = vsel %vm115_vm1, %v112_v8, %v114_v16 }
  0xe9   :  { %v119_v19 = vsel %vm117_vm2, %v118_v18, %v116_v17 }
  0xea   :  { %v120_v25 = vadd.f32 1e-05, %v119_v19 }
  0xec   :  { %v262_v20 = vpop.eup %261  ;;  %263 = vrcp.f32 %v120_v25 }
  0xed   :  { %v192_v21 = vmul.f32 %v262_v20, %v190_v14 }
  0xef   :  { %v194_v26 = vsel %vm193_vm3, %v190_v14, %v192_v21 }
  0xf0   :  { %v197_v28 = vsel %vm195_vm4, %v196_v24, %v194_v26 }
  0xf1   :  { %v198_v29 = vadd.f32 1e-05, %v197_v28 }
  0xf3   :  { %265 = vrcp.f32 %v198_v29 }
  0xf6   :  { %v264_v34 = vpop.eup %263 }
  0xfd   :  { %v266_v36 = vpop.eup %265 }
  0xfe   :  { %v222_v38 = vmul.f32 %v266_v36, %v264_v34 }
 0x100   :  { %v230_v40 = vrot.slane %v222_v38, %v207_v31 }
 0x102   :  { %v232_v41 = vmul.f32 %v230_v40, %v221_v39 }
 0x104   :  { %233 = vst [vmem:[#allocation7] sm:$0xff] %v232_v41 }
 0x105   :  { %325 = shalt.err (!%p322_p12)
}
 0x106   :  { %s326_s10 = scalar_lea.hbm %s442_s2, 128 }
 0x107   :  { %p327_p13 = scmp.ne.s32.totalorder %s442_s2, %s326_s10  ;;  %p330_p0 = scmp.lt.u32.totalorder %s326_s10, %s442_s2 }
 0x109   :  { %p332_p1 = pnand %p330_p0, %p327_p13 }
 0x10b   :  { %335 = shalt.err (!%p332_p1)
}
 0x10c   :  { %243 = dma.vmem_to_hbm [thread:$0]  %s241_s1, 128, %s442_s2, [#allocation4]  }
 0x10d   :  { %340 = dma.done.wait [#allocation4], 128  }
 0x10e   :  { %341 = vsyncadd [#allocation4], 4294967168 }
 0x10f   :  { %247 = vsyncpa [#allocation3], 1 }
 0x110   :  { %248 = vsyncpa [#allocation6], 1 }
 0x111   :  { %249 = vsyncpa [#allocation4], 1 }

</bundles_post_ra>
